<compile_context>
chip_gen: v5e
topology: v5e:2x2
jax: 0.10.0
libtpu: 0.0.40
codegen_flags: <defaults>
</compile_context>

<pallas_src>
import jax
import jax.numpy as jnp
from jax.experimental import pallas as pl
from jax.experimental.pallas import tpu as pltpu

HIDDEN = 128  # mlp hidden size from the module spec


def _round_up(x, m):
    return (x + m - 1) // m * m


def _has_bf16_vpu():
    """v6e/v7x VPUs handle bf16 elementwise math; v2-v5 do not."""
    try:
        kind = jax.devices()[0].device_kind.lower()
    except Exception:
        return False
    return not any(tag in kind for tag in ("v2", "v3", "v4", "v5"))


def _state_predictor_kernel(s_ref, a_ref, w1s_ref, w1a_ref, b1_ref,
                            w2_ref, b2_ref, w3_ref, b3_ref, out_ref):
    # Inputs arrive f32 in VMEM; cast to bf16 for the MXU (VPU cast, cheap).
    s = s_ref[...].astype(jnp.bfloat16)
    a = a_ref[...].astype(jnp.bfloat16)

    # Layer 1: fused concat-matmul (state @ W1_s + action @ W1_a), f32 accum.
    h1 = jnp.dot(s, w1s_ref[...], preferred_element_type=jnp.float32)
    h1 = h1 + jnp.dot(a, w1a_ref[...], preferred_element_type=jnp.float32)
    # Bias/ReLU epilogue in the bias dtype (bf16 on v6e/v7x, f32 on v5e).
    h1 = jnp.maximum(h1.astype(b1_ref.dtype) + b1_ref[...], 0)
    h1 = h1.astype(jnp.bfloat16)

    # Layer 2: Linear + ReLU.
    h2 = jnp.dot(h1, w2_ref[...], preferred_element_type=jnp.float32)
    h2 = jnp.maximum(h2.astype(b2_ref.dtype) + b2_ref[...], 0)
    h2 = h2.astype(jnp.bfloat16)

    # Layer 3: Linear, no activation.  Output columns are the true obs_dim
    # (no lane padding) so the HBM writeback is narrow.
    y = jnp.dot(h2, w3_ref[...], preferred_element_type=jnp.float32)
    out_ref[...] = (y + b3_ref[...].astype(jnp.float32)).astype(out_ref.dtype)


def pack_params(params, obs_dim, *, bf16_epilogue=None):
    """One-time weight prep (hoisted out of the per-call forward path)."""
    if bf16_epilogue is None:
        bf16_epilogue = _has_bf16_vpu()
    ep = jnp.bfloat16 if bf16_epilogue else jnp.float32
    w1 = params["w1"]
    return {
        "w1_s": w1[:obs_dim, :].astype(jnp.bfloat16),     # [obs_dim, H]
        "w1_a": w1[obs_dim:, :].astype(jnp.bfloat16),     # [act_dim, H]
        "b1": params["b1"].reshape(1, -1).astype(ep),     # [1, H]
        "w2": params["w2"].astype(jnp.bfloat16),          # [H, H]
        "b2": params["b2"].reshape(1, -1).astype(ep),     # [1, H]
        "w3": params["w3"].astype(jnp.bfloat16),          # [H, obs_dim]
        "b3": params["b3"].reshape(1, -1).astype(jnp.float32),  # [1, obs_dim]
    }


def state_predictor_forward(state, action, packed, *, tile_b=1024):
    """state: [B, obs_dim] f32, action: [B, act_dim] f32 -> [B, obs_dim] f32."""
    B, obs_dim = state.shape
    act_dim = action.shape[1]
    H = packed["w2"].shape[0]
    out_dim = packed["w3"].shape[1]

    # Batch tile: big enough to amortize the ~0.35 us/step overhead, but keep
    # the grid >= 2 steps when B allows it (v7x megacore), multiple of 8.
    TILE_B = max(8, min(tile_b, _round_up(pl.cdiv(B, 2), 8)))

    # Pad batch only to the sublane multiple (8); last grid block may be
    # partial.  Skip the pad entirely when already aligned.
    B_pad = _round_up(B, 8)
    s, a = state, action
    if B_pad != B:
        s = jnp.pad(s, ((0, B_pad - B), (0, 0)))
        a = jnp.pad(a, ((0, B_pad - B), (0, 0)))

    grid = (pl.cdiv(B_pad, TILE_B),)

    # Advisory cost estimate for XLA scheduling around the call.
    in_dim = obs_dim + act_dim
    flops = 2 * B_pad * (in_dim * H + H * H + H * out_dim)
    bytes_accessed = (B_pad * (obs_dim + act_dim + out_dim) * 4   # f32 acts
                      + (in_dim * H + H * H + H * out_dim) * 2    # bf16 weights
                      + (2 * H + out_dim) * 4)                    # biases
    cost = pl.CostEstimate(flops=flops, transcendentals=0,
                           bytes_accessed=bytes_accessed)

    resident = lambda shape: pl.BlockSpec(shape, lambda i: (0, 0))

    out = pl.pallas_call(
        _state_predictor_kernel,
        out_shape=jax.ShapeDtypeStruct((B_pad, out_dim), jnp.float32),
        grid=grid,
        in_specs=[
            pl.BlockSpec((TILE_B, obs_dim), lambda i: (i, 0)),   # state tile
            pl.BlockSpec((TILE_B, act_dim), lambda i: (i, 0)),   # action tile
            resident((obs_dim, H)),                              # w1_s
            resident((act_dim, H)),                              # w1_a
            resident((1, H)),                                    # b1
            resident((H, H)),                                    # w2
            resident((1, H)),                                    # b2
            resident((H, out_dim)),                              # w3
            resident((1, out_dim)),                              # b3
        ],
        out_specs=pl.BlockSpec((TILE_B, out_dim), lambda i: (i, 0)),
        compiler_params=pltpu.CompilerParams(
            dimension_semantics=("parallel",),
            vmem_limit_bytes=32 << 20),
        cost_estimate=cost,
    )(s, a, packed["w1_s"], packed["w1_a"], packed["b1"],
      packed["w2"], packed["b2"], packed["w3"], packed["b3"])

    return out[:B] if B_pad != B else out


def init_params(key, obs_dim, act_dim, hidden=HIDDEN):
    """Deterministic synthetic parameters (shapes from the nn.Module)."""
    in_dim = obs_dim + act_dim
    k1, k2, k3 = jax.random.split(key, 3)

    def linear(k, fan_in, fan_out):
        kw, kb = jax.random.split(k)
        bound = 1.0 / jnp.sqrt(fan_in)
        w = jax.random.uniform(kw, (fan_in, fan_out), jnp.float32, -bound, bound)
        b = jax.random.uniform(kb, (1, fan_out), jnp.float32, -bound, bound)
        return w, b

    w1, b1 = linear(k1, in_dim, hidden)
    w2, b2 = linear(k2, hidden, hidden)
    w3, b3 = linear(k3, hidden, obs_dim)
    return {"w1": w1, "b1": b1, "w2": w2, "b2": b2, "w3": w3, "b3": b3}


def reference_forward(state, action, packed):
    """Pure-JAX reference with the same cast points as the kernel."""
    bf = jnp.bfloat16
    h1 = (jnp.dot(state.astype(bf), packed["w1_s"],
                  preferred_element_type=jnp.float32)
          + jnp.dot(action.astype(bf), packed["w1_a"],
                    preferred_element_type=jnp.float32))
    h1 = jnp.maximum(h1.astype(packed["b1"].dtype) + packed["b1"], 0).astype(bf)
    h2 = jnp.dot(h1, packed["w2"], preferred_element_type=jnp.float32)
    h2 = jnp.maximum(h2.astype(packed["b2"].dtype) + packed["b2"], 0).astype(bf)
    y = jnp.dot(h2, packed["w3"], preferred_element_type=jnp.float32)
    return y + packed["b3"].astype(jnp.float32)


if __name__ == "__main__":
    obs_dim, act_dim, batch = 4, 2, 8
    key = jax.random.PRNGKey(0)
    k_state, k_action, k_params = jax.random.split(key, 3)

    state = jax.random.normal(k_state, (batch, obs_dim), jnp.float32)
    action = jax.random.normal(k_action, (batch, act_dim), jnp.float32)
    params = init_params(k_params, obs_dim, act_dim)

    # Weight prep happens once, outside the forward hot path.
    packed = pack_params(params, obs_dim)

    forward = jax.jit(state_predictor_forward, static_argnames=("tile_b",))
    out = forward(state, action, packed)
    out = jax.block_until_ready(out)

    ref = reference_forward(state, action, packed)
    assert out.shape == (batch, obs_dim), out.shape
    assert out.dtype == jnp.float32, out.dtype
    assert jnp.allclose(out, ref, atol=2e-3, rtol=2e-3), (
        float(jnp.max(jnp.abs(out - ref))))

    # NOTE: bf16 weights/activations deviate from PyTorch f32 Linear math;
    # parity vs. a strict f32 reference holds only to ~1e-2.
    # TODO(synk): compute_next_state (per-robot scalar control flow,
    # collision/energy bookkeeping) is host-side logic, not a kernel hot path.
    print("KERNEL_OK")
</pallas_src>

<mosaic_0001>
module attributes {stable_mosaic.version = 11 : i64} {
  func.func @_state_predictor_kernel(%arg0: i32, %arg1: memref<8x4xf32, #tpu.memory_space<vmem>>, %arg2: memref<8x2xf32, #tpu.memory_space<vmem>>, %arg3: memref<4x128xbf16, #tpu.memory_space<vmem>>, %arg4: memref<2x128xbf16, #tpu.memory_space<vmem>>, %arg5: memref<1x128xbf16, #tpu.memory_space<vmem>>, %arg6: memref<128x128xbf16, #tpu.memory_space<vmem>>, %arg7: memref<1x128xbf16, #tpu.memory_space<vmem>>, %arg8: memref<128x4xbf16, #tpu.memory_space<vmem>>, %arg9: memref<1x4xf32, #tpu.memory_space<vmem>>, %arg10: memref<8x4xf32, #tpu.memory_space<vmem>>) attributes {dimension_semantics = [#tpu.dimension_semantics<parallel>], iteration_bounds = array<i64: 1>, scalar_prefetch = 0 : i64, scratch_operands = 0 : i64, tpu.core_type = #tpu.core_type<tc>, window_params = [{transform_indices = @transform_0, window_bounds = array<i64: 8, 4>}, {transform_indices = @transform_1, window_bounds = array<i64: 8, 2>}, {pipeline_mode = #tpu.pipeline_mode<synchronous>, transform_indices = @transform_2, window_bounds = array<i64: 4, 128>}, {pipeline_mode = #tpu.pipeline_mode<synchronous>, transform_indices = @transform_3, window_bounds = array<i64: 2, 128>}, {pipeline_mode = #tpu.pipeline_mode<synchronous>, transform_indices = @transform_4, window_bounds = array<i64: 1, 128>}, {pipeline_mode = #tpu.pipeline_mode<synchronous>, transform_indices = @transform_5, window_bounds = array<i64: 128, 128>}, {pipeline_mode = #tpu.pipeline_mode<synchronous>, transform_indices = @transform_6, window_bounds = array<i64: 1, 128>}, {pipeline_mode = #tpu.pipeline_mode<synchronous>, transform_indices = @transform_7, window_bounds = array<i64: 128, 4>}, {pipeline_mode = #tpu.pipeline_mode<synchronous>, transform_indices = @transform_8, window_bounds = array<i64: 1, 4>}, {transform_indices = @transform_9, window_bounds = array<i64: 8, 4>}]} {
    %c0 = arith.constant 0 : index
    %c0_0 = arith.constant 0 : index
    %0 = vector.load %arg1[%c0, %c0_0] : memref<8x4xf32, #tpu.memory_space<vmem>>, vector<8x4xf32>
    %1 = arith.truncf %0 : vector<8x4xf32> to vector<8x4xbf16>
    %c0_1 = arith.constant 0 : index
    %c0_2 = arith.constant 0 : index
    %2 = vector.load %arg2[%c0_1, %c0_2] : memref<8x2xf32, #tpu.memory_space<vmem>>, vector<8x2xf32>
    %3 = arith.truncf %2 : vector<8x2xf32> to vector<8x2xbf16>
    %c0_3 = arith.constant 0 : index
    %c0_4 = arith.constant 0 : index
    %4 = vector.load %arg3[%c0_3, %c0_4] : memref<4x128xbf16, #tpu.memory_space<vmem>>, vector<4x128xbf16>
    %cst = arith.constant dense<0.000000e+00> : vector<8x128xf32>
    %5 = tpu.matmul %1, %4, %cst {dimension_numbers = #tpu.dot_dimension_numbers<[1], [0], [0], [1], [0, 0, 1, 1], [], []>} : vector<8x4xbf16>, vector<4x128xbf16>, vector<8x128xf32> -> vector<8x128xf32>
    %c0_5 = arith.constant 0 : index
    %c0_6 = arith.constant 0 : index
    %6 = vector.load %arg4[%c0_5, %c0_6] : memref<2x128xbf16, #tpu.memory_space<vmem>>, vector<2x128xbf16>
    %cst_7 = arith.constant dense<0.000000e+00> : vector<8x128xf32>
    %7 = tpu.matmul %3, %6, %cst_7 {dimension_numbers = #tpu.dot_dimension_numbers<[1], [0], [0], [1], [0, 0, 1, 1], [], []>} : vector<8x2xbf16>, vector<2x128xbf16>, vector<8x128xf32> -> vector<8x128xf32>
    %8 = arith.addf %5, %7 : vector<8x128xf32>
    %9 = arith.truncf %8 : vector<8x128xf32> to vector<8x128xbf16>
    %c0_8 = arith.constant 0 : index
    %c0_9 = arith.constant 0 : index
    %10 = vector.load %arg5[%c0_8, %c0_9] : memref<1x128xbf16, #tpu.memory_space<vmem>>, vector<1x128xbf16>
    %11 = vector.broadcast %10 : vector<1x128xbf16> to vector<8x128xbf16>
    %12 = arith.addf %9, %11 : vector<8x128xbf16>
    %cst_10 = arith.constant 0.000000e+00 : bf16
    %13 = vector.broadcast %cst_10 : bf16 to vector<8x128xbf16>
    %14 = arith.maximumf %12, %13 : vector<8x128xbf16>
    %c0_11 = arith.constant 0 : index
    %c0_12 = arith.constant 0 : index
    %15 = vector.load %arg6[%c0_11, %c0_12] : memref<128x128xbf16, #tpu.memory_space<vmem>>, vector<128x128xbf16>
    %cst_13 = arith.constant dense<0.000000e+00> : vector<8x128xf32>
    %16 = tpu.matmul %14, %15, %cst_13 {dimension_numbers = #tpu.dot_dimension_numbers<[1], [0], [0], [1], [0, 0, 1, 1], [], []>} : vector<8x128xbf16>, vector<128x128xbf16>, vector<8x128xf32> -> vector<8x128xf32>
    %17 = arith.truncf %16 : vector<8x128xf32> to vector<8x128xbf16>
    %c0_14 = arith.constant 0 : index
    %c0_15 = arith.constant 0 : index
    %18 = vector.load %arg7[%c0_14, %c0_15] : memref<1x128xbf16, #tpu.memory_space<vmem>>, vector<1x128xbf16>
    %19 = vector.broadcast %18 : vector<1x128xbf16> to vector<8x128xbf16>
    %20 = arith.addf %17, %19 : vector<8x128xbf16>
    %cst_16 = arith.constant 0.000000e+00 : bf16
    %21 = vector.broadcast %cst_16 : bf16 to vector<8x128xbf16>
    %22 = arith.maximumf %20, %21 : vector<8x128xbf16>
    %c0_17 = arith.constant 0 : index
    %c0_18 = arith.constant 0 : index
    %23 = vector.load %arg8[%c0_17, %c0_18] : memref<128x4xbf16, #tpu.memory_space<vmem>>, vector<128x4xbf16>
    %cst_19 = arith.constant dense<0.000000e+00> : vector<8x4xf32>
    %24 = tpu.matmul %22, %23, %cst_19 {dimension_numbers = #tpu.dot_dimension_numbers<[1], [0], [0], [1], [0, 0, 1, 1], [], []>} : vector<8x128xbf16>, vector<128x4xbf16>, vector<8x4xf32> -> vector<8x4xf32>
    %c0_20 = arith.constant 0 : index
    %c0_21 = arith.constant 0 : index
    %25 = vector.load %arg9[%c0_20, %c0_21] : memref<1x4xf32, #tpu.memory_space<vmem>>, vector<1x4xf32>
    %26 = vector.broadcast %25 : vector<1x4xf32> to vector<8x4xf32>
    %27 = arith.addf %24, %26 : vector<8x4xf32>
    %c0_22 = arith.constant 0 : index
    %c0_23 = arith.constant 0 : index
    %28 = vector.load %arg10[%c0_22, %c0_23] : memref<8x4xf32, #tpu.memory_space<vmem>>, vector<8x4xf32>
    tpu.vector_store %arg10[%c0_22, %c0_23], %27 {strides = array<i32>} : memref<8x4xf32, #tpu.memory_space<vmem>>, vector<8x4xf32>,
    return
  }
  func.func @transform_0(%arg0: i32) -> (i32, i32) {
    %c0_i32 = arith.constant 0 : i32
    %c0_i32_0 = arith.constant 0 : i32
    return %arg0, %c0_i32 : i32, i32
  }
  func.func @transform_1(%arg0: i32) -> (i32, i32) {
    %c0_i32 = arith.constant 0 : i32
    %c0_i32_0 = arith.constant 0 : i32
    return %arg0, %c0_i32 : i32, i32
  }
  func.func @transform_2(%arg0: i32) -> (i32, i32) {
    %c0_i32 = arith.constant 0 : i32
    %c0_i32_0 = arith.constant 0 : i32
    %c0_i32_1 = arith.constant 0 : i32
    return %c0_i32, %c0_i32_0 : i32, i32
  }
  func.func @transform_3(%arg0: i32) -> (i32, i32) {
    %c0_i32 = arith.constant 0 : i32
    %c0_i32_0 = arith.constant 0 : i32
    %c0_i32_1 = arith.constant 0 : i32
    return %c0_i32, %c0_i32_0 : i32, i32
  }
  func.func @transform_4(%arg0: i32) -> (i32, i32) {
    %c0_i32 = arith.constant 0 : i32
    %c0_i32_0 = arith.constant 0 : i32
    %c0_i32_1 = arith.constant 0 : i32
    return %c0_i32, %c0_i32_0 : i32, i32
  }
  func.func @transform_5(%arg0: i32) -> (i32, i32) {
    %c0_i32 = arith.constant 0 : i32
    %c0_i32_0 = arith.constant 0 : i32
    %c0_i32_1 = arith.constant 0 : i32
    return %c0_i32, %c0_i32_0 : i32, i32
  }
  func.func @transform_6(%arg0: i32) -> (i32, i32) {
    %c0_i32 = arith.constant 0 : i32
    %c0_i32_0 = arith.constant 0 : i32
    %c0_i32_1 = arith.constant 0 : i32
    return %c0_i32, %c0_i32_0 : i32, i32
  }
  func.func @transform_7(%arg0: i32) -> (i32, i32) {
    %c0_i32 = arith.constant 0 : i32
    %c0_i32_0 = arith.constant 0 : i32
    %c0_i32_1 = arith.constant 0 : i32
    return %c0_i32, %c0_i32_0 : i32, i32
  }
  func.func @transform_8(%arg0: i32) -> (i32, i32) {
    %c0_i32 = arith.constant 0 : i32
    %c0_i32_0 = arith.constant 0 : i32
    %c0_i32_1 = arith.constant 0 : i32
    return %c0_i32, %c0_i32_0 : i32, i32
  }
  func.func @transform_9(%arg0: i32) -> (i32, i32) {
    %c0_i32 = arith.constant 0 : i32
    %c0_i32_0 = arith.constant 0 : i32
    return %arg0, %c0_i32 : i32, i32
  }
}

</mosaic_0001>

<bundles_post_ra>
// kernel: state_predictor_forward.1
= control target key start
LH: loop header
LB: loop body
LE: loop exit
PB: predicated region body
PF: predicated region fallthrough
CT: control target
= control target key end

     0   :  { %vm43_vm0 = vcmask 1040384   ;;  %vm64_vm1 = vcmask 1041408   ;;  %vm39_vm2 = vcmask 15360   ;;  %vm60_vm3 = vcmask 31744   ;;  %s477_s3 = inlined_call_operand.vmem [shape: bf16[2,128], index: 3, kind: input, shape index: {}]   ;;  %s478_s2 = inlined_call_operand.vmem [shape: bf16[4,128], index: 2, kind: input, shape index: {}]   ;;  %s479_s1 = inlined_call_operand.vmem [shape: f32[8,2], index: 1, kind: input, shape index: {}]   ;;  %s480_s0 = inlined_call_operand.vmem [shape: f32[8,4], index: 0, kind: input, shape index: {}]   ;;  %s481_s5 = inlined_call_operand.vmem [shape: bf16[128,128], index: 5, kind: input, shape index: {}]   ;;  %s482_s7 = inlined_call_operand.vmem [shape: bf16[128,4], index: 7, kind: input, shape index: {}]   ;;  %s483_s4 = inlined_call_operand.vmem [shape: bf16[1,128], index: 4, kind: input, shape index: {}]   ;;  %s484_s8 = inlined_call_operand.vmem [shape: f32[1,4], index: 8, kind: input, shape index: {}]   ;;  %s485_s6 = inlined_call_operand.vmem [shape: bf16[1,128], index: 6, kind: input, shape index: {}]   ;;  %s486_s9 = inlined_call_operand.vmem [shape: f32[8,4], index: 9, kind: output, shape index: {}]  }
   0x1   :  { %v38_v0 = vld [vmem:[%s477_s3] sm:$0x1]  ;;  %v343_v7 = vld [vmem:[%s481_s5 + $0x38] sm:$0xff]  ;;  %v342_v9 = vld [vmem:[%s481_s5 + $0x30] sm:$0xff] }
   0x2   :  { %v37_v1 = vld [vmem:[%s478_s2] sm:$0x3]  ;;  %v45_v3 = vsel %vm43_vm0, %v38_v0, 0  ;;  %158 = vmatpush.bf16.msra.mxu2 %v343_v7  ;;  %v341_v10 = vld [vmem:[%s481_s5 + $0x28] sm:$0xff]  ;;  %v339_v12 = vld [vmem:[%s481_s5 + $0x18] sm:$0xff] }
   0x3   :  { %v35_v2 = vld [vmem:[%s479_s1] sm:$0xff]  ;;  %v66_v4 = vsel %vm64_vm1, %v37_v1, 0  ;;  %54 = vmatpush.bf16.msra.mxu0 %v45_v3  ;;  %v338_v13 = vld [vmem:[%s481_s5 + $0x10] sm:$0xff]  ;;  %v337_v14 = vld [vmem:[%s481_s5 + $0x8] sm:$0xff] }
   0x4   :  { %v36_v5 = vpack.c.bf16 %v35_v2, %v35_v2  ;;  %v33_v6 = vld [vmem:[%s480_s0] sm:$0xff]  ;;  %75 = vmatpush.bf16.msra.mxu1 %v66_v4  ;;  %v351_v16 = vld [vmem:[%s482_s7 + $0x38] sm:$0xff]  ;;  %v350_v17 = vld [vmem:[%s482_s7 + $0x30] sm:$0xff] }
   0x5   :  { %v34_v8 = vpack.c.bf16 %v33_v6, %v33_v6  ;;  %v340_v11 = vld [vmem:[%s481_s5 + $0x20] sm:$0xff]  ;;  %252 = vmatpush.bf16.msra.mxu3 %v351_v16  ;;  %v349_v18 = vld [vmem:[%s482_s7 + $0x28] sm:$0xff]  ;;  %v347_v22 = vld [vmem:[%s482_s7 + $0x18] sm:$0xff] }
   0x6   :  { %270 = vmatmul.msk.bf16.vlgmr.msra.gmra.mxu0 %vm39_vm2, %v36_v5  ;;  %159 = vmatpush.bf16.msra.mxu2 %v342_v9  ;;  %v336_v15 = vld [vmem:[%s481_s5] sm:$0xff]  ;;  %v346_v35 = vld [vmem:[%s482_s7 + $0x10] sm:$0xff]  ;;  %v345_v36 = vld [vmem:[%s482_s7 + $0x8] sm:$0xff] }
   0x7   :  { %271 = vmatmul.msk.bf16.vlgmr.msra.gmra.mxu1 %vm60_vm3, %v34_v8  ;;  %v348_v19 = vld [vmem:[%s482_s7 + $0x20] sm:$0xff] }
   0x8   :  { %v82_v20 = vld [vmem:[%s483_s4] sm:$0x1] }
   0x9   :  { %253 = vmatpush.bf16.msra.mxu3 %v350_v17  ;;  %v84_v21 = vpack.i.b16 %v82_v20, %v82_v20  ;;  %v344_v37 = vld [vmem:[%s482_s7] sm:$0xff] }
   0xa   :  { %160 = vmatpush.bf16.msra.mxu2 %v341_v10  ;;  %v172_v38 = vld [vmem:[%s485_s6] sm:$0x1] }
   0xb   :  { %v86_v23 = vperm.slane %v84_v21, 0  ;;  %v174_v39 = vpack.i.b16 %v172_v38, %v172_v38  ;;  %v352_v49 = vld [vmem:[%s484_s8] ss:$0 sm:$0xff] }
   0xd   :  { %254 = vmatpush.bf16.msra.mxu3 %v349_v18  ;;  %v88_v28 = vunpack.c.l.bf16 %v86_v23  ;;  %v176_v40 = vperm.slane %v174_v39, 0 }
   0xe   :  { %161 = vmatpush.bf16.msra.mxu2 %v340_v11 }
   0xf   :  { %v178_v43 = vunpack.c.l.bf16 %v176_v40 }
  0x11   :  { %255 = vmatpush.bf16.msra.mxu3 %v348_v19 }
  0x12   :  { %162 = vmatpush.bf16.msra.mxu2 %v339_v12 }
  0x15   :  { %256 = vmatpush.bf16.msra.mxu3 %v347_v22 }
  0x16   :  { %163 = vmatpush.bf16.msra.mxu2 %v338_v13 }
  0x19   :  { %257 = vmatpush.bf16.msra.mxu3 %v346_v35 }
  0x1a   :  { %164 = vmatpush.bf16.msra.mxu2 %v337_v14 }
  0x1d   :  { %258 = vmatpush.bf16.msra.mxu3 %v345_v36 }
  0x1e   :  { %165 = vmatpush.bf16.msra.mxu2 %v336_v15 }
  0x21   :  { %259 = vmatpush.bf16.msra.mxu3 %v344_v37 }
  0x83   :  { %v56_v24 = vpop.f32.mrf.mxu0 }
  0x84   :  { %v77_v25 = vpop.f32.mrf.mxu1 }
  0x85   :  { %v78_v26 = vadd.f32 %v77_v25, %v56_v24 }
  0x87   :  { %v81_v27 = vpack.c.bf16 %v78_v26, %v78_v26 }
  0x89   :  { %v87_v29 = vunpack.c.l.bf16 %v81_v27 }
  0x8b   :  { %v89_v30 = vadd.f32 %v88_v28, %v87_v29  ;;  %v58_v31 = vpop.f32.mrf.mxu0 }
  0x8c   :  { %v79_v32 = vpop.f32.mrf.mxu1 }
  0x8d   :  { %v92_v33 = vmax.f32 %v89_v30, 0.0 }
  0x8f   :  { %v93_v34 = vpack.c.bf16 %v92_v33, %v92_v33 }
  0x91   :  { %166 = vmatmul.bf16.vlgmr.msra.gmra.mxu2 %v93_v34 }
 0x114   :  { %v167_v41 = vpop.f32.mrf.mxu2 }
 0x115   :  { %v171_v42 = vpack.c.bf16 %v167_v41, %v167_v41 }
 0x117   :  { %v177_v44 = vunpack.c.l.bf16 %v171_v42 }
 0x119   :  { %v179_v45 = vadd.f32 %v178_v43, %v177_v44 }
 0x11b   :  { %v182_v46 = vmax.f32 %v179_v45, 0.0 }
 0x11c   :  { %v169_v47 = vpop.f32.mrf.mxu2 }
 0x11d   :  { %v183_v48 = vpack.c.bf16 %v182_v46, %v182_v46 }
 0x11f   :  { %260 = vmatmul.bf16.vlgmr.msra.gmra.mxu3 %v183_v48 }
 0x1a2   :  { %v261_v50 = vpop.f32.mrf.mxu3 }
 0x1a3   :  { %v262_v51 = vadd.f32 %v352_v49, %v261_v50 }
 0x1a5   :  { %265 = vst.msk [vmem:[%s486_s9] sm:$0xff] %vm60_vm3, %v262_v51 }
 0x1aa   :  { %v263_v52 = vpop.f32.mrf.mxu3 }

</bundles_post_ra>
